<compile_context>
chip_gen: v7x
topology: tpu7x:2x2x1
jax: 0.10.0
libtpu: 0.0.40
codegen_flags: <defaults>
</compile_context>

<pallas_src>
import functools
import math

import jax
import jax.numpy as jnp
from jax.experimental import pallas as pl
from jax.experimental.pallas import tpu as pltpu

HIGHEST = jax.lax.Precision.HIGHEST


def _wrapper_kernel(x_ref, w_ref, blr_ref, out_ref, *, L):
    # Packed input: upcast once to f32 (v5e VPU/EUP are f32-only; bf16 is HBM-storage only).
    x = x_ref[...].astype(jnp.float32)                                   # (TM, Kp)

    # Single MXU contraction against the block-diagonal packed weight.
    z = jnp.dot(x, w_ref[...], preferred_element_type=jnp.float32)      # (TM, 2L+2)

    net_out = z[:, :L]                                  # inner-net proxy (mean over F folded into W)
    lr_pred = jnp.log1p(z[:, L:2 * L] + blr_ref[...])  # lr branch (softmax hoisted into W)
    ggate = jnp.tanh(z[:, 2 * L:2 * L + 1])            # gov gate (time-mean folded into W)
    sgate = z[:, 2 * L + 1:2 * L + 2]                  # precomputed state gate, passthrough column

    out = (net_out + lr_pred) * (1.0 + sgate * ggate)

    # Single full-block, lane-contiguous writeback: [out | gov_gate].
    out_ref[...] = jnp.concatenate([out, ggate], axis=1)


def _pick_tile_rows(M, cap=8192):
    """Largest divisor of M that is a multiple of 8 and <= min(cap, ceil(M/2)).

    Divisor => no wrapper-side jnp.pad copy is ever needed; the ceil(M/2) target means
    grid >= 2 blocks whenever possible so both of v7x's TensorCores get work; the cap keeps
    double-buffered tiles well below v7x's 64 MiB VMEM.  Falls back to one full block
    (block dim == full array dim is always legal) if M has no suitable divisor.
    """
    target = min(cap, max(8, (M + 1) // 2))
    best = 0
    d = 1
    while d * d <= M:
        if M % d == 0:
            for t in (d, M // d):
                if t <= target and t % 8 == 0 and t > best:
                    best = t
        d += 1
    return best if best > 0 else M


def wrapper_net_forward(input_day, input_day_gov, n_id, params, *, label_idx,
                        act_dtype=jnp.bfloat16):
    """input_day: (B, N, T, F), input_day_gov: (B, N, T, Fg), n_id: (N,) int32."""
    B, N, T, F = input_day.shape
    Fg = input_day_gov.shape[-1]
    L = params["weight_lr"].shape[1]
    M = B * N

    K_day, K_ts, K_gov = T * F, T, T * Fg
    k_sg = K_day + K_ts + K_gov                        # sgate passthrough lane
    Kp = max(128, ((k_sg + 1 + 127) // 128) * 128)     # pad lanes to a multiple of 128
    n_cols = 2 * L + 2                                 # [net | lr_lin | gov_gate_lin | sgate]

    # ---- parameter-only work hoisted out of the kernel: block-diagonal packed weight.
    w = jnp.zeros((Kp, n_cols), jnp.float32)
    w = w.at[:K_day, :L].set(jnp.repeat(params["w_net"] / F, F, axis=0))           # mean over F folded in
    w = w.at[K_day:K_day + K_ts, L:2 * L].set(jax.nn.softmax(params["weight_lr"], axis=0))
    w = w.at[K_day + K_ts:k_sg, 2 * L:2 * L + 1].set(
        jnp.tile(params["gov_weight"] / T, (T, 1)))                                # time-mean folded in
    w = w.at[k_sg, 2 * L + 1].set(1.0)                                             # sgate passthrough
    blr = params["b_lr"].reshape(1, L).astype(jnp.float32)

    # ---- batch-independent state gate: computed once here, not B*grid times in-kernel.
    sgate_n = jax.nn.sigmoid(
        jnp.dot(jnp.take(params["state_emb"], n_id, axis=0), params["state_weight"],
                precision=HIGHEST))                                                # (N, 1)
    sgate_m = jnp.broadcast_to(sgate_n[None], (B, N, 1)).reshape(M, 1)

    # ---- ONE lane-dense packed activation stream (reshape / expm1 / concat fuse in XLA).
    day_flat = input_day.reshape(M, K_day)
    ts = jnp.expm1(input_day[..., label_idx]).reshape(M, K_ts)
    gov_flat = input_day_gov.reshape(M, K_gov)
    x_packed = jnp.concatenate(
        [day_flat, ts, gov_flat, sgate_m,
         jnp.zeros((M, Kp - (k_sg + 1)), input_day.dtype)], axis=1).astype(act_dtype)

    # ---- tiling over the flattened batch*node axis: divisor of M => no pad copy needed.
    TM = _pick_tile_rows(M)
    grid_m = M // TM

    itemsize = jnp.dtype(act_dtype).itemsize
    tile_bytes = TM * Kp * itemsize + TM * (L + 1) * 4
    vmem_limit = int(min(max(2 * tile_bytes + 2 * Kp * n_cols * 4 + (1 << 20), 16 << 20),
                         48 << 20))

    kernel = functools.partial(_wrapper_kernel, L=L)
    packed = pl.pallas_call(
        kernel,
        out_shape=jax.ShapeDtypeStruct((M, L + 1), jnp.float32),
        grid_spec=pl.GridSpec(
            grid=(grid_m,),
            in_specs=[
                pl.BlockSpec((TM, Kp), lambda i: (i, 0)),
                pl.BlockSpec((Kp, n_cols), lambda i: (0, 0)),
                pl.BlockSpec((1, L), lambda i: (0, 0)),
            ],
            out_specs=pl.BlockSpec((TM, L + 1), lambda i: (i, 0)),
        ),
        compiler_params=pltpu.CompilerParams(
            dimension_semantics=("parallel",),
            vmem_limit_bytes=vmem_limit),
    )(x_packed, w, blr)

    out = packed[:, :L].reshape(B, N, L)
    ggate = jnp.broadcast_to(packed[:, L:L + 1], (M, L)).reshape(B, N, L)
    sgate = jnp.broadcast_to(sgate_m, (M, L)).reshape(B, N, L)
    return out, sgate, ggate


def _xavier_uniform(key, shape):
    fan_in, fan_out = shape[0], shape[1]
    a = math.sqrt(6.0 / (fan_in + fan_out))
    return jax.random.uniform(key, shape, jnp.float32, minval=-a, maxval=a)


def _reference(input_day, input_day_gov, n_id, params, *, label_idx):
    # pure-JAX replica of the PyTorch forward (with the same linear proxy net)
    B, N, T, F = input_day.shape
    L = params["weight_lr"].shape[1]
    ts = jnp.expm1(input_day[..., label_idx])                                      # (B,N,T)
    w = jax.nn.softmax(params["weight_lr"], axis=0)
    lr_pred = jnp.log1p(
        jnp.einsum("bnt,tl->bnl", ts, w, precision=HIGHEST) + params["b_lr"])
    net_out = jnp.einsum("bnt,tl->bnl", jnp.mean(input_day, axis=-1), params["w_net"],
                         precision=HIGHEST)
    ori = net_out + lr_pred
    gov_hid = jnp.mean(input_day_gov, axis=2)                                      # (B,N,Fg)
    id_emb = jnp.broadcast_to(params["state_emb"][n_id][None],
                              (B, N, params["state_emb"].shape[1]))
    sgate = jax.nn.sigmoid(jnp.einsum("bnd,dl->bnl", id_emb, params["state_weight"],
                                      precision=HIGHEST))                          # (B,N,1)
    ggate = jnp.tanh(jnp.einsum("bnf,fl->bnl", gov_hid, params["gov_weight"],
                                precision=HIGHEST))                                # (B,N,1)
    sgate = jnp.broadcast_to(sgate, (B, N, L))
    ggate = jnp.broadcast_to(ggate, (B, N, L))
    return ori * (1 + sgate * ggate), sgate, ggate


if __name__ == "__main__":
    # config: lookback_days=16, lookahead_days=8, day_fea_dim=8, day_gov_fea_dim=4,
    #         num_nodes=8, gov_id_dim=gov_hid_dim=8, label='deaths_target' -> idx -3,
    #         use_lr=True, use_gov_gate=True
    B, N, T, L = 2, 8, 16, 8
    F, Fg, De = 8, 4, 8
    label_idx = -3

    key = jax.random.PRNGKey(0)
    k_day, k_gov, k_wlr, k_net, k_emb, k_sw, k_gw = jax.random.split(key, 7)

    input_day = jax.random.normal(k_day, (B, N, T, F), jnp.float32) * 0.5
    input_day_gov = jax.random.normal(k_gov, (B, N, T, Fg), jnp.float32) * 0.5
    n_id = jnp.arange(N, dtype=jnp.int32)  # g['cent_n_id']

    params = {
        "weight_lr": _xavier_uniform(k_wlr, (T, L)),
        "b_lr": jnp.zeros((L,), jnp.float32),
        "w_net": _xavier_uniform(k_net, (T, L)),          # deterministic proxy for self.net
        "state_emb": jax.random.normal(k_emb, (N, De), jnp.float32),
        "state_weight": _xavier_uniform(k_sw, (De, 1)),
        "gov_weight": _xavier_uniform(k_gw, (Fg, 1)),
    }

    ref_out, ref_sg, ref_gg = _reference(
        input_day, input_day_gov, n_id, params, label_idx=label_idx)

    # f32 activations: exact-semantics check; bf16 activations: the halved-HBM-bytes
    # production path, checked at a looser tolerance.
    for act_dtype, tol in ((jnp.float32, 1e-4), (jnp.bfloat16, 5e-2)):
        out, sgate, ggate = wrapper_net_forward(
            input_day, input_day_gov, n_id, params, label_idx=label_idx,
            act_dtype=act_dtype)
        jax.block_until_ready(out)
        assert out.shape == (B, N, L)
        assert jnp.allclose(out, ref_out, atol=tol, rtol=tol), act_dtype
        assert jnp.allclose(sgate, ref_sg, atol=tol, rtol=tol), act_dtype
        assert jnp.allclose(ggate, ref_gg, atol=tol, rtol=tol), act_dtype

    print("KERNEL_OK")
</pallas_src>

<mosaic_0001>
module attributes {stable_mosaic.version = 11 : i64} {
  func.func @_wrapper_kernel(%arg0: i32, %arg1: memref<8x256xf32, #tpu.memory_space<vmem>>, %arg2: memref<256x18xf32, #tpu.memory_space<vmem>>, %arg3: memref<1x8xf32, #tpu.memory_space<vmem>>, %arg4: memref<8x9xf32, #tpu.memory_space<vmem>>) attributes {dimension_semantics = [#tpu.dimension_semantics<parallel>], iteration_bounds = array<i64: 2>, scalar_prefetch = 0 : i64, scratch_operands = 0 : i64, tpu.core_type = #tpu.core_type<tc>, window_params = [{transform_indices = @transform_0, window_bounds = array<i64: 8, 256>}, {pipeline_mode = #tpu.pipeline_mode<synchronous>, transform_indices = @transform_1, window_bounds = array<i64: 256, 18>}, {pipeline_mode = #tpu.pipeline_mode<synchronous>, transform_indices = @transform_2, window_bounds = array<i64: 1, 8>}, {transform_indices = @transform_3, window_bounds = array<i64: 8, 9>}]} {
    %c0 = arith.constant 0 : index
    %c0_0 = arith.constant 0 : index
    %0 = vector.load %arg1[%c0, %c0_0] : memref<8x256xf32, #tpu.memory_space<vmem>>, vector<8x256xf32>
    %c0_1 = arith.constant 0 : index
    %c0_2 = arith.constant 0 : index
    %1 = vector.load %arg2[%c0_1, %c0_2] : memref<256x18xf32, #tpu.memory_space<vmem>>, vector<256x18xf32>
    %cst = arith.constant dense<0.000000e+00> : vector<8x18xf32>
    %2 = tpu.matmul %0, %1, %cst {dimension_numbers = #tpu.dot_dimension_numbers<[1], [0], [0], [1], [0, 0, 1, 1], [], []>} : vector<8x256xf32>, vector<256x18xf32>, vector<8x18xf32> -> vector<8x18xf32>
    %3 = vector.extract_strided_slice %2 {offsets = [0, 0], sizes = [8, 8], strides = [1, 1]} : vector<8x18xf32> to vector<8x8xf32>
    %4 = vector.extract_strided_slice %2 {offsets = [0, 8], sizes = [8, 8], strides = [1, 1]} : vector<8x18xf32> to vector<8x8xf32>
    %c0_3 = arith.constant 0 : index
    %c0_4 = arith.constant 0 : index
    %5 = vector.load %arg3[%c0_3, %c0_4] : memref<1x8xf32, #tpu.memory_space<vmem>>, vector<1x8xf32>
    %6 = vector.broadcast %5 : vector<1x8xf32> to vector<8x8xf32>
    %7 = arith.addf %4, %6 : vector<8x8xf32>
    %8 = math.log1p %7 : vector<8x8xf32>
    %9 = vector.extract_strided_slice %2 {offsets = [0, 16], sizes = [8, 1], strides = [1, 1]} : vector<8x18xf32> to vector<8x1xf32>
    %10 = math.tanh %9 : vector<8x1xf32>
    %11 = vector.extract_strided_slice %2 {offsets = [0, 17], sizes = [8, 1], strides = [1, 1]} : vector<8x18xf32> to vector<8x1xf32>
    %12 = arith.addf %3, %8 : vector<8x8xf32>
    %13 = arith.mulf %11, %10 : vector<8x1xf32>
    %cst_5 = arith.constant 1.000000e+00 : f32
    %14 = vector.broadcast %cst_5 : f32 to vector<8x1xf32>
    %15 = arith.addf %14, %13 : vector<8x1xf32>
    %16 = vector.broadcast %15 : vector<8x1xf32> to vector<8x8xf32>
    %17 = arith.mulf %12, %16 : vector<8x8xf32>
    %18 = tpu.concatenate %17, %10 in 1 : vector<8x8xf32>, vector<8x1xf32> -> vector<8x9xf32>
    %c0_6 = arith.constant 0 : index
    %c0_7 = arith.constant 0 : index
    %19 = vector.load %arg4[%c0_6, %c0_7] : memref<8x9xf32, #tpu.memory_space<vmem>>, vector<8x9xf32>
    tpu.vector_store %arg4[%c0_6, %c0_7], %18 {strides = array<i32>} : memref<8x9xf32, #tpu.memory_space<vmem>>, vector<8x9xf32>,
    return
  }
  func.func @transform_0(%arg0: i32) -> (i32, i32) {
    %c0_i32 = arith.constant 0 : i32
    %c0_i32_0 = arith.constant 0 : i32
    return %arg0, %c0_i32 : i32, i32
  }
  func.func @transform_1(%arg0: i32) -> (i32, i32) {
    %c0_i32 = arith.constant 0 : i32
    %c0_i32_0 = arith.constant 0 : i32
    %c0_i32_1 = arith.constant 0 : i32
    return %c0_i32, %c0_i32_0 : i32, i32
  }
  func.func @transform_2(%arg0: i32) -> (i32, i32) {
    %c0_i32 = arith.constant 0 : i32
    %c0_i32_0 = arith.constant 0 : i32
    %c0_i32_1 = arith.constant 0 : i32
    return %c0_i32, %c0_i32_0 : i32, i32
  }
  func.func @transform_3(%arg0: i32) -> (i32, i32) {
    %c0_i32 = arith.constant 0 : i32
    %c0_i32_0 = arith.constant 0 : i32
    return %arg0, %c0_i32 : i32, i32
  }
}

</mosaic_0001>

<bundles_post_ra>
// kernel: tpu_custom_call.1
= control target key start
LH: loop header
LB: loop body
LE: loop exit
PB: predicated region body
PF: predicated region fallthrough
CT: control target
= control target key end

     0   :  { %8 = vsyncpa [#allocation3], 0  ;;  %s811_s0 = inlined_call_operand.vmem [shape: f32[16,256], index: 0, kind: input, shape index: {}]   ;;  %s812_s1 = inlined_call_operand.vmem [shape: f32[256,18], index: 1, kind: input, shape index: {}]   ;;  %s813_s2 = inlined_call_operand.vmem [shape: f32[1,8], index: 2, kind: input, shape index: {}]   ;;  %s814_s3 = inlined_call_operand.hbm [shape: f32[16,9], index: 3, kind: output, shape index: {}]  }
   0x1   :  { %10 = vsyncpa [#allocation3 + $0x1], 0  ;;  %s608_s12 = smov 0   ;;  %s610_s13 = smov 0  }
   0x2   :  { %s612_s14 = smov 0   ;;  %s614_s15 = smov 0  }
   0x3 LB: > { %s629_s16 = sadd.s32 4294967295, %s581_s15   ;;  %s390_s17 = sadd.s32 4294967294, %s581_s15   ;;  %s581_s15 = sphi %s614_s15, %s820_s15   ;;  %s577_s14 = sphi %s612_s14, %s819_s14   ;;  %s573_s13 = sphi %s610_s13, %s818_s13   ;;  %s569_s12 = sphi %s608_s12, %s817_s12  }
   0x4   : > { %s633_s18 = sadd.s32 1, %s581_s15   ;;  %s91_s19 = sadd.s32 1, %s577_s14 }
   0x5   : > { %s88_s20 = ssub.s32 %s581_s15, %s633_s18  ;;  %p101_p0 = scmp.ne.s32.totalorder %s577_s14, %s573_s13 }
   0x6   : > { %p89_p1 = scmp.eq.s32.totalorder %s88_s20, 0  ;;  %p102_p2 = scmp.eq.s32.totalorder %s629_s16, 1 }
   0x7   : > { %p107_p3 = scmp.ne.s32.totalorder %s573_s13, %s569_s12  ;;  %p108_p4 = scmp.eq.s32.totalorder %s390_s17, 1 }
   0x8   : > { %s644_s21 = scalar_select %p89_p1, %s577_s14, %s91_s19  }
   0x9   : > { %p646_p5 = por %p102_p2, %p101_p0  ;;  %p650_p6 = por %p108_p4, %p107_p3 }
   0xa   : > { %p393_p7 = scmp.ge.s32.totalorder %s581_s15, 1  ;;  %p140_p8 = scmp.lt.s32.totalorder %s581_s15, 3 }
   0xc   : > { %p141_p9 = pnand %p393_p7, %p140_p8 }
   0xd   : > { %v187_v0 = vld [vmem:[%s812_s1 + $0x80] sm:$0xff] (!%p141_p9)  ;;  %v188_v1 = vld [vmem:[%s812_s1 + $0x88] sm:$0xff] (!%p141_p9)  ;;  %p164_p10 = scmp.lt.s32.totalorder (!%p141_p9), %s629_s16, 1  ;;  %v189_v5 = vld [vmem:[%s812_s1 + $0x90] sm:$0xff] (!%p141_p9)  ;;  %s583_s4 = smov (!%p141_p9), 8   ;;  %v584_v54 = vmov (!%p141_p9), 17  }
   0xe   : > { %144 = sbr.rel (%p141_p9) target bundleno = 544 (0x220), region = 32  ;;  %v171_v2 = vld [vmem:[%s812_s1] sm:$0xff] (!%p141_p9)  ;;  %v438_v3 = vpack.c.bf16 (!%p141_p9), %v188_v1, %v187_v0  ;;  %v172_v4 = vld [vmem:[%s812_s1 + $0x8] sm:$0xff] (!%p141_p9)  ;;  %v190_v6 = vld [vmem:[%s812_s1 + $0x98] sm:$0xff] (!%p141_p9)  ;;  %513 = vset.pattern.permute.xlu1 (!%p141_p9), %v584_v54  ;;  %514 = vset.pattern.permute.xlu0 (!%p141_p9), %v584_v54  ;;  %s585_s26 = smov (!%p141_p9), 1   ;;  %vm313_vm1 = vcmask (!%p141_p9), 64512  }
   0xf   : > { %v440_v7 = vpack.c.bf16 (!%p141_p9), %v172_v4, %v171_v2  ;;  %v442_v8 = vpack.c.bf16 (!%p141_p9), %v190_v6, %v189_v5  ;;  %v173_v9 = vld [vmem:[%s812_s1 + $0x10] sm:$0xff] (!%p141_p9)  ;;  %v174_v10 = vld [vmem:[%s812_s1 + $0x18] sm:$0xff] (!%p141_p9)  ;;  %v191_v11 = vld [vmem:[%s812_s1 + $0xa0] sm:$0xff] (!%p141_p9)  ;;  %s586_s28 = smov (!%p141_p9), 120   ;;  %s399_s29 = sshll.u32 (!%p141_p9), %s629_s16, 7  ;;  %vm315_vm2 = vcmask (!%p141_p9), 72704  }
  0x10   : > { %439 = vmatprep.subr.bf16.mxu0 (!%p141_p9), %v438_v3  ;;  %v192_v12 = vld [vmem:[%s812_s1 + $0xa8] sm:$0xff] (!%p141_p9)  ;;  %v444_v13 = vpack.c.bf16 (!%p141_p9), %v174_v10, %v173_v9  ;;  %v175_v15 = vld [vmem:[%s812_s1 + $0x20] sm:$0xff] (!%p141_p9)  ;;  %v193_v17 = vld [vmem:[%s812_s1 + $0xb0] sm:$0xff] (!%p141_p9)  ;;  %s769_s7 = scalar_lea.hbm (!%p141_p9), %s814_s3, %s399_s29  ;;  %s587_s9 = smov (!%p141_p9), [#allocation2]  }
  0x11   : > { %441 = vmatpush3.bf16.msra.mxu0 (!%p141_p9), %v440_v7  ;;  %v446_v14 = vpack.c.bf16 (!%p141_p9), %v192_v12, %v191_v11  ;;  %v176_v16 = vld [vmem:[%s812_s1 + $0x28] sm:$0xff] (!%p141_p9)  ;;  %v194_v18 = vld [vmem:[%s812_s1 + $0xb8] sm:$0xff] (!%p141_p9)  ;;  %v177_v21 = vld [vmem:[%s812_s1 + $0x30] sm:$0xff] (!%p141_p9)  ;;  %s523_s10 = sshll.u32 (!%p141_p9), %s587_s9, 4  ;;  %s524_s10 = int_to_ptr.vmem [resolvable:$false] %s523_s10 }
  0x12   : > { %443 = vmatprep.subr.bf16.mxu0 (!%p141_p9), %v442_v8  ;;  %v448_v19 = vpack.c.bf16 (!%p141_p9), %v176_v16, %v175_v15  ;;  %v450_v20 = vpack.c.bf16 (!%p141_p9), %v194_v18, %v193_v17  ;;  %v178_v22 = vld [vmem:[%s812_s1 + $0x38] sm:$0xff] (!%p141_p9)  ;;  %v195_v23 = vld [vmem:[%s812_s1 + $0xc0] sm:$0xff] (!%p141_p9)  ;;  %v196_v24 = vld [vmem:[%s812_s1 + $0xc8] sm:$0xff] (!%p141_p9)  ;;  %s525_s17 = scalar_lea.vmem (!%p141_p9), %s524_s10, 256 }
  0x13   : > { %v397_v26 = vld [vmem:[%s813_s2] ss:$0 sm:$0xff] (!%p141_p9)  ;;  %v452_v27 = vpack.c.bf16 (!%p141_p9), %v178_v22, %v177_v21  ;;  %v454_v28 = vpack.c.bf16 (!%p141_p9), %v196_v24, %v195_v23  ;;  %v180_v30 = vld [vmem:[%s812_s1 + $0x48] sm:$0xff] (!%p141_p9)  ;;  %v197_v31 = vld [vmem:[%s812_s1 + $0xd0] sm:$0xff] (!%p141_p9) }
  0x14   : > { %279 = vrot.lane.b32.xlu0 (!%p141_p9), %v397_v26, %s583_s4  ;;  %v179_v29 = vld [vmem:[%s812_s1 + $0x40] sm:$0xff] (!%p141_p9)  ;;  %v198_v32 = vld [vmem:[%s812_s1 + $0xd8] sm:$0xff] (!%p141_p9)  ;;  %v181_v35 = vld [vmem:[%s812_s1 + $0x50] sm:$0xff] (!%p141_p9) }
  0x15   : > { %s165_s24 = scalar_select %p164_p10, %s629_s16, 1  ;;  %445 = vmatpush3.bf16.msra.mxu0 %v444_v13  ;;  %v456_v33 = vpack.c.bf16 %v180_v30, %v179_v29  ;;  %v458_v34 = vpack.c.bf16 %v198_v32, %v197_v31  ;;  %v182_v36 = vld [vmem:[%s812_s1 + $0x58] sm:$0xff]  ;;  %v199_v37 = vld [vmem:[%s812_s1 + $0xe0] sm:$0xff]  ;;  %v200_v38 = vld [vmem:[%s812_s1 + $0xe8] sm:$0xff] }
  0x16   : > { %447 = vmatprep.subr.bf16.mxu0 %v446_v14  ;;  %v460_v39 = vpack.c.bf16 %v182_v36, %v181_v35  ;;  %v462_v40 = vpack.c.bf16 %v200_v38, %v199_v37  ;;  %v183_v41 = vld [vmem:[%s812_s1 + $0x60] sm:$0xff]  ;;  %v184_v42 = vld [vmem:[%s812_s1 + $0x68] sm:$0xff]  ;;  %v201_v43 = vld [vmem:[%s812_s1 + $0xf0] sm:$0xff] }
  0x17   : > { %s402_s27 = sshll.u32 %s165_s24, 4  ;;  %v202_v44 = vld [vmem:[%s812_s1 + $0xf8] sm:$0xff]  ;;  %v464_v45 = vpack.c.bf16 %v184_v42, %v183_v41  ;;  %v185_v47 = vld [vmem:[%s812_s1 + $0x70] sm:$0xff] }
  0x18   : > { %s703_s11 = scalar_lea.vmem %s811_s0, %s402_s27  ;;  %v466_v46 = vpack.c.bf16 %v202_v44, %v201_v43  ;;  %v186_v48 = vld [vmem:[%s812_s1 + $0x78] sm:$0xff] }
  0x19   : > { %v170_v25 = vld [vmem:[%s703_s11 + $0x8] sm:$0xff]  ;;  %449 = vmatpush3.bf16.msra.mxu0 %v448_v19  ;;  %v468_v49 = vpack.c.bf16 %v186_v48, %v185_v47  ;;  %v169_v50 = vld [vmem:[%s703_s11] sm:$0xff]  ;;  %s161_s11 = sand.u32 1, %s573_s13  }
  0x1a   : > { %267 = vmatprep.mubr.f32.mxu0 %v170_v25  ;;  %451 = vmatprep.subr.bf16.mxu0 %v450_v20  ;;  %s394_s27 = sshll.u32 %s161_s11, 3  ;;  %s318_s8 = scalar_lea.sflag [#allocation3], %s161_s11 }
  0x1b   : > { %s163_s30 = scalar_lea.vmem [#allocation2], %s394_s27 }
  0x1c   : > { %s331_s4 = sshll.u32 %s163_s30, 4  ;;  %s771_s4 = int_to_ptr.vmem [resolvable:$true] %s331_s4 }
  0x1d   : > { %453 = vmatpush3.bf16.msra.mxu0 %v452_v27  ;;  %s519_s16 = scalar_lea.vmem %s771_s4, 128  ;;  %p526_p0 = scmp.lt.s32.totalorder %s771_s4, %s524_s10 }
  0x1e   : > { %455 = vmatprep.subr.bf16.mxu0 %v454_v28  ;;  %p520_p11 = scmp.ne.s32.totalorder %s771_s4, %s519_s16  ;;  %p527_p1 = scmp.lt.s32.totalorder %s525_s17, %s519_s16 }
  0x20   : > { %p521_p12 = pnand %p520_p11, %p646_p5  ;;  %p528_p2 = por %p527_p1, %p526_p0 }
  0x21   : > { %457 = vmatpush3.bf16.msra.mxu0 %v456_v33 }
  0x22   : > { %459 = vmatprep.subr.bf16.mxu0 %v458_v34  ;;  %p522_p13 = pneg %p521_p12 }
  0x24   : > { %p529_p3 = pnand %p528_p2, %p522_p13 }
  0x25   : > { %461 = vmatpush3.bf16.msra.mxu0 %v460_v39 }
  0x26   : > { %463 = vmatprep.subr.bf16.mxu0 %v462_v40 }
  0x29   : > { %465 = vmatpush3.bf16.msra.mxu0 %v464_v45 }
  0x2a   : > { %467 = vmatprep.subr.bf16.mxu0 %v466_v46 }
  0x2d   : > { %469 = vmatpush3.bf16.msra.mxu0 %v468_v49 }
  0x30   : > { %268 = vmatmul.mubr.f32.vlgmr.msra.gmra.mrb[0].mxu0 %v169_v50 }
  0x86   : > { %v280_v56 = vpop.permute.xlu0 %279 }
 0x103   : > { %v435_v51 = vpop.f32.mrb[0].mxu0 }
 0x104   : > { %v436_v52 = vpop.f32.mrb[1].mxu0 }
 0x105   : > { %v437_v53 = vadd.f32 %v436_v52, %v435_v51 }
 0x107   : > { %515 = vtanh.f32 %v437_v53  ;;  %v282_v57 = vadd.f32 %v437_v53, %v280_v56 }
 0x109   : > { %v283_v58 = vadd.f32 1.0, %v282_v57  ;;  %v286_v59 = vmul.f32 -0.5, %v282_v57  ;;  %v289_v1 = vand.u32 2147483647, %v282_v57 }
 0x10b   : > { %517 = vlog2.f32 %v283_v58  ;;  %v287_v63 = vadd.f32 1.0, %v286_v59  ;;  %vm290_vm0 = vcmp.lt.f32.partialorder %v289_v1, 0.0004427343 }
 0x10d   : > { %v288_v3 = vmul.f32 %v287_v63, %v282_v57 }
 0x111   : > { %v516_v55 = vpop.eup %515 }
 0x112   : > { %299 = vrot.lane.b32.xlu0 %v516_v55, %s585_s26 }
 0x115   : > { %v518_v61 = vpop.eup %517 }
 0x116   : > { %310 = vrot.lane.b32.xlu0 %v516_v55, %s586_s28  ;;  %v285_v2 = vmul.f32 0.6931472, %v518_v61 }
 0x118   : > { %v291_v4 = vsel %vm290_vm0, %v288_v3, %v285_v2 }
 0x184   : > { %v300_v60 = vpop.permute.xlu0 %299 }
 0x185   : > { %v302_v62 = vmul.f32 %v437_v53, %v300_v60 }
 0x187   : > { %v303_v0 = vadd.f32 1.0, %v302_v62 }
 0x188   : > { %v311_v9 = vpop.permute.xlu0 %310 }
 0x189   : > { %306 = vperm.xlu1 %513, %v303_v0  }
 0x18d   : > { %294 = vrot.lane.b32.xlu1 %v291_v4, %s586_s28 }
 0x208   : > { %v307_v5 = vpop.permute.xlu1 %306 }
 0x20c   : > { %v295_v6 = vpop.permute.xlu1 %294 }
 0x20d   : > { %v297_v7 = vadd.f32 %v437_v53, %v295_v6 }
 0x20f   : > { %v309_v8 = vmul.f32 %v307_v5, %v297_v7 }
 0x211   : > { %v314_v10 = vsel %vm313_vm1, %v309_v8, %v311_v9 }
 0x212   : > { %316 = vst.msk [vmem:[%s163_s30] sm:$0xff] %vm315_vm2, %v314_v10 }
 0x213   : > { %532 = shalt.err (!%p529_p3)
}
 0x214   : > { %s533_s19 = scalar_lea.hbm %s769_s7, 128  ;;  %s537_s25 = scalar_lea.hbm %s814_s3, 256 }
 0x215   : > { %p534_p4 = scmp.ne.s32.totalorder %s769_s7, %s533_s19  ;;  %p538_p9 = scmp.lt.u32.totalorder %s769_s7, %s814_s3 }
 0x216   : > { %p539_p10 = scmp.lt.u32.totalorder %s537_s25, %s533_s19  ;;  %p541_p12 = scmp.lt.u32.totalorder %s533_s19, %s769_s7 }
 0x217   : > { %p535_p7 = pnand %p534_p4, %p646_p5 }
 0x218   : > { %p540_p11 = por %p539_p10, %p538_p9 }
 0x219   : > { %p536_p8 = pneg %p535_p7 }
 0x21a   : > { %p542_p13 = por %p541_p12, %p540_p11 }
 0x21c   : > { %p543_p0 = pnand %p542_p13, %p536_p8 }
 0x21e   : > { %546 = shalt.err (!%p543_p0)
}
 0x21f   : > { %470 = dma.vmem_to_hbm [thread:$0]  (%p646_p5), %s771_s4, 128, %s769_s7, %s318_s8  }
 0x220 PF: > { %p476_p1 = scmp.ge.s32.totalorder %s581_s15, 2  ;;  %s343_s11 = sand.u32 1, %s569_s12  }
 0x221   : > { %s344_s27 = scalar_lea.sflag [#allocation3], %s343_s11 }
 0x222   : > { %p473_p2 = pnand %p476_p1, %p650_p6 }
 0x224   : > { %564 = dma.done.wait (!%p473_p2), %s344_s27, 128  }
 0x225   : > { %566 = vsyncadd (!%p473_p2), %s344_s27, 4294967168  ;;  %p13_p3 = scmp.ge.s32.totalorder %s633_s18, 4   ;;  %s817_s12 = smov %s573_s13 }
 0x226   : > { %s818_s13 = smov %s577_s14  ;;  %s819_s14 = smov %s644_s21 }
 0x227   : > { %s820_s15 = smov %s633_s18  ;;  %15 = sbr.rel (!%p13_p3) target bundleno = 3 (0x3), region = 67 }
 0x22e   :  { %349 = vsyncpa [#allocation3], 1 }
 0x22f   :  { %351 = vsyncpa [#allocation3 + $0x1], 1 }

</bundles_post_ra>
